<compile_context>
chip_gen: v6e
topology: v6e:2x2x1
jax: 0.10.0
libtpu: 0.0.40
codegen_flags: <defaults>
</compile_context>

<pallas_src>
import jax
import jax.numpy as jnp
from jax.experimental import pallas as pl
from jax.experimental.pallas import tpu as pltpu

EPS = 1e-5  # torch.nn.LayerNorm default


def _round_up(n, m):
    return ((n + m - 1) // m) * m


def _cdiv(a, b):
    return (a + b - 1) // b


def _vmem_capacity_bytes():
    # Per-generation VMEM (v5e/v6e: 128 MiB, v7x: 64 MiB per TensorCore).
    try:
        return int(pltpu.get_tpu_info().vmem_capacity_bytes)
    except Exception:
        return 64 * 2**20  # conservative fallback (v7x per-TC VMEM)


def _footprint(tm, tn, D, x_bytes, out_bytes):
    # Approximate VMEM footprint: double-buffered pipelined blocks + scratch.
    return (2 * tm * D * x_bytes        # x row tiles
            + 2 * tm * tn * out_bytes   # output tiles
            + 2 * D * tn * 2            # W^T column tiles (bf16)
            + 2 * 8 * tn * 4            # bias tiles (sublane-padded)
            + 2 * 2 * 8 * D * 4         # gamma / beta (sublane-padded)
            + tm * D * 2)               # cached LN(x) scratch (bf16)


def _choose_tiles(D, budget, x_bytes, out_bytes):
    def fits(tm, tn):
        return _footprint(tm, tn, D, x_bytes, out_bytes) <= budget

    # Weight-resident path: tn = D and a grid-invariant weight block index,
    # so the whole bf16 W^T is DMA'd exactly once for the entire kernel.
    for tm in (256, 128, 64, 32, 16, 8):
        if fits(tm, D):
            return tm, D, True
    # Tiled-weight fallback: prefer big tm (FLOPs per weight byte ~= tm),
    # then big tn, within the per-chip VMEM budget.
    for tm in (512, 256, 128, 64, 32, 16, 8):
        for tn in (512, 256, 128):
            if tn < D and D % tn == 0 and fits(tm, tn):
                return tm, tn, False
    return 8, 128, False


def prenorm_kernel(x_ref, gamma_ref, beta_ref, w_ref, b_ref, o_ref, xn_ref):
    # Grid: (row_tiles, col_tiles).  j = output-column tile of the Linear.
    # LayerNorm is computed once per row tile (at j == 0) and cached in the
    # bf16 VMEM scratch xn_ref; every j step is then a pure MXU matmul.
    j = pl.program_id(1)

    @pl.when(j == 0)
    def _():
        x = x_ref[...].astype(jnp.float32)            # LN statistics in f32
        mean = jnp.mean(x, axis=-1, keepdims=True)
        xc = x - mean
        var = jnp.mean(xc * xc, axis=-1, keepdims=True)
        inv = jax.lax.rsqrt(var + EPS)
        xn = xc * inv * gamma_ref[...] + beta_ref[...]   # gamma/beta pre-cast f32
        xn_ref[...] = xn.astype(xn_ref.dtype)            # downcast once for MXU

    # fn = Linear(dim, dim):  y = LN(x) @ W^T[:, j-tile] + b[j-tile]
    y = jnp.dot(xn_ref[...], w_ref[...], preferred_element_type=jnp.float32)
    o_ref[...] = (y + b_ref[...]).astype(o_ref.dtype)


def prenorm(x, gamma, beta, w_t, b, *, out_dtype=None):
    """x: (B, S, D).  Returns fn(LayerNorm(x)) with fn = Linear(D, D).

    `w_t` is W^T with shape (D, D).  Pass it pre-cast to bfloat16 to avoid a
    per-call HBM round trip for the cast (the astype below is then a no-op).
    `out_dtype=jnp.bfloat16` halves output write traffic when acceptable.
    """
    B, S, D = x.shape
    # TODO(synk): support D not a multiple of 128 via masked LN statistics /
    # padded lanes; for now require lane-dense D (the measured big lever).
    assert D % 128 == 0, "D must be a multiple of 128 (lane-dense output)"
    N = B * S
    out_dtype = x.dtype if out_dtype is None else out_dtype

    vmem_cap = _vmem_capacity_bytes()
    budget = int(0.8 * vmem_cap)
    x_bytes = jnp.dtype(x.dtype).itemsize
    out_bytes = jnp.dtype(out_dtype).itemsize

    tm_cap, tn, weight_resident = _choose_tiles(D, budget, x_bytes, out_bytes)

    # Balanced row tiles: bound pad waste to < one sublane group per tile.
    g = _cdiv(N, tm_cap)
    tm = _round_up(_cdiv(N, g), 8)
    g = _cdiv(N, tm)
    # Megacore (v7x): keep >= 2 steps on the "parallel" row axis when possible.
    if g == 1 and N > 8:
        tm = _round_up(_cdiv(N, 2), 8)
        g = _cdiv(N, tm)
    n_pad = g * tm

    x2 = x.reshape(N, D)
    if n_pad != N:
        x2 = jnp.pad(x2, ((0, n_pad - N), (0, 0)))

    # Grid-invariant operands: cast once in the wrapper (no per-step casts).
    gamma2 = gamma.reshape(1, D).astype(jnp.float32)
    beta2 = beta.reshape(1, D).astype(jnp.float32)
    w_bf16 = w_t.astype(jnp.bfloat16)   # no-op if caller already passed bf16
    b2 = b.reshape(1, D).astype(jnp.float32)

    grid = (g, D // tn)

    # Weight block index: grid-invariant when the whole W^T is resident (DMA'd
    # exactly once); otherwise column-tiled over the "arbitrary" j axis.
    if weight_resident:
        w_index = lambda i, j: (0, 0)
        b_index = lambda i, j: (0, 0)
    else:
        w_index = lambda i, j: (0, j)
        b_index = lambda i, j: (0, j)

    fp = _footprint(tm, tn, D, x_bytes, out_bytes)
    vmem_limit = int(min(max(int(1.5 * fp), 32 * 2**20), budget))
    vmem_limit = max(vmem_limit, fp)

    # TODO(synk): pipeline_mode=pl.Buffered(1) on the grid-invariant specs
    # (gamma/beta and the resident W^T) would free their second VMEM buffer;
    # left at default double-buffering for compile-compatibility.
    out = pl.pallas_call(
        prenorm_kernel,
        out_shape=jax.ShapeDtypeStruct((n_pad, D), out_dtype),
        grid_spec=pltpu.PrefetchScalarGridSpec(
            num_scalar_prefetch=0,
            grid=grid,
            in_specs=[
                pl.BlockSpec((tm, D), lambda i, j: (i, 0)),   # x rows
                pl.BlockSpec((1, D), lambda i, j: (0, 0)),    # gamma (f32)
                pl.BlockSpec((1, D), lambda i, j: (0, 0)),    # beta  (f32)
                pl.BlockSpec((D, tn), w_index),               # W^T (bf16)
                pl.BlockSpec((1, tn), b_index),               # bias col tile
            ],
            out_specs=pl.BlockSpec((tm, tn), lambda i, j: (i, j)),
            scratch_shapes=[pltpu.VMEM((tm, D), jnp.bfloat16)],   # cached LN(x)
        ),
        compiler_params=pltpu.CompilerParams(
            dimension_semantics=("parallel", "arbitrary"),
            vmem_limit_bytes=vmem_limit),
    )(x2, gamma2, beta2, w_bf16, b2)

    return out[:N].reshape(B, S, D)


def prenorm_ref(x, gamma, beta, w_t, b):
    xf = x.astype(jnp.float32)
    mean = jnp.mean(xf, axis=-1, keepdims=True)
    var = jnp.mean((xf - mean) ** 2, axis=-1, keepdims=True)
    xn = (xf - mean) * jax.lax.rsqrt(var + EPS) * gamma + beta
    return xn @ w_t + b


if __name__ == "__main__":
    key = jax.random.PRNGKey(0)
    B, S, D = 2, 8, 128   # lane-dense D (multiple of 128)
    kx, kw, kb = jax.random.split(key, 3)

    x = jax.random.normal(kx, (B, S, D), dtype=jnp.float32)

    # LayerNorm params: torch default init (gamma=1, beta=0)
    gamma = jnp.ones((D,), jnp.float32)
    beta = jnp.zeros((D,), jnp.float32)

    # fn = Linear(D, D) params, deterministic init
    w = jax.random.normal(kw, (D, D), dtype=jnp.float32) * 0.02   # torch (out, in)
    w_t = w.T                                                     # y = x @ W^T + b
    b = jax.random.normal(kb, (D,), dtype=jnp.float32) * 0.02

    # Hoisted weight cast (done once where the params live, not per call).
    w_t_bf16 = w_t.astype(jnp.bfloat16)

    y = prenorm(x, gamma, beta, w_t_bf16, b)
    y = jax.block_until_ready(y)

    y_ref = prenorm_ref(x, gamma, beta, w_t, b)
    # bf16 MXU operands -> loosened tolerance (precision tradeoff, not a bug).
    assert jnp.allclose(y, y_ref, atol=1e-2, rtol=1e-2), "mismatch vs reference"

    print("KERNEL_OK")
</pallas_src>

<mosaic_0001>
module attributes {stable_mosaic.version = 11 : i64} {
  func.func @prenorm_kernel(%arg0: i32, %arg1: i32, %arg2: memref<8x128xf32, #tpu.memory_space<vmem>>, %arg3: memref<1x128xf32, #tpu.memory_space<vmem>>, %arg4: memref<1x128xf32, #tpu.memory_space<vmem>>, %arg5: memref<128x128xbf16, #tpu.memory_space<vmem>>, %arg6: memref<1x128xf32, #tpu.memory_space<vmem>>, %arg7: memref<8x128xf32, #tpu.memory_space<vmem>>, %arg8: memref<8x128xbf16, #tpu.memory_space<vmem>>) attributes {dimension_semantics = [#tpu.dimension_semantics<parallel>, #tpu.dimension_semantics<arbitrary>], iteration_bounds = array<i64: 2, 1>, scalar_prefetch = 0 : i64, scratch_operands = 1 : i64, tpu.core_type = #tpu.core_type<tc>, window_params = [{transform_indices = @transform_0, window_bounds = array<i64: 8, 128>}, {pipeline_mode = #tpu.pipeline_mode<synchronous>, transform_indices = @transform_1, window_bounds = array<i64: 1, 128>}, {pipeline_mode = #tpu.pipeline_mode<synchronous>, transform_indices = @transform_2, window_bounds = array<i64: 1, 128>}, {pipeline_mode = #tpu.pipeline_mode<synchronous>, transform_indices = @transform_3, window_bounds = array<i64: 128, 128>}, {pipeline_mode = #tpu.pipeline_mode<synchronous>, transform_indices = @transform_4, window_bounds = array<i64: 1, 128>}, {transform_indices = @transform_5, window_bounds = array<i64: 8, 128>}]} {
    %c0_i32 = arith.constant 0 : i32
    %0 = arith.cmpi eq, %arg1, %c0_i32 : i32
    %1 = arith.extui %0 : i1 to i32
    %c0_i32_0 = arith.constant 0 : i32
    %2 = arith.cmpi ne, %1, %c0_i32_0 : i32
    scf.if %2 {
      %c0_8 = arith.constant 0 : index
      %c0_9 = arith.constant 0 : index
      %10 = vector.load %arg2[%c0_8, %c0_9] : memref<8x128xf32, #tpu.memory_space<vmem>>, vector<8x128xf32>
      %cst_10 = arith.constant dense<0.000000e+00> : vector<8xf32>
      %11 = vector.multi_reduction <add>, %10, %cst_10 [1] : vector<8x128xf32> to vector<8xf32>
      %12 = vector.shape_cast %11 : vector<8xf32> to vector<8x1xf32>
      %cst_11 = arith.constant 1.280000e+02 : f32
      %13 = vector.broadcast %cst_11 : f32 to vector<8x1xf32>
      %14 = arith.divf %12, %13 : vector<8x1xf32>
      %15 = vector.broadcast %14 : vector<8x1xf32> to vector<8x128xf32>
      %16 = arith.subf %10, %15 : vector<8x128xf32>
      %17 = arith.mulf %16, %16 : vector<8x128xf32>
      %cst_12 = arith.constant dense<0.000000e+00> : vector<8xf32>
      %18 = vector.multi_reduction <add>, %17, %cst_12 [1] : vector<8x128xf32> to vector<8xf32>
      %19 = vector.shape_cast %18 : vector<8xf32> to vector<8x1xf32>
      %cst_13 = arith.constant 1.280000e+02 : f32
      %20 = vector.broadcast %cst_13 : f32 to vector<8x1xf32>
      %21 = arith.divf %19, %20 : vector<8x1xf32>
      %cst_14 = arith.constant 9.99999974E-6 : f32
      %22 = vector.broadcast %cst_14 : f32 to vector<8x1xf32>
      %23 = arith.addf %21, %22 : vector<8x1xf32>
      %24 = math.rsqrt %23 : vector<8x1xf32>
      %25 = vector.broadcast %24 : vector<8x1xf32> to vector<8x128xf32>
      %26 = arith.mulf %16, %25 : vector<8x128xf32>
      %c0_15 = arith.constant 0 : index
      %c0_16 = arith.constant 0 : index
      %27 = vector.load %arg3[%c0_15, %c0_16] : memref<1x128xf32, #tpu.memory_space<vmem>>, vector<1x128xf32>
      %28 = vector.broadcast %27 : vector<1x128xf32> to vector<8x128xf32>
      %29 = arith.mulf %26, %28 : vector<8x128xf32>
      %c0_17 = arith.constant 0 : index
      %c0_18 = arith.constant 0 : index
      %30 = vector.load %arg4[%c0_17, %c0_18] : memref<1x128xf32, #tpu.memory_space<vmem>>, vector<1x128xf32>
      %31 = vector.broadcast %30 : vector<1x128xf32> to vector<8x128xf32>
      %32 = arith.addf %29, %31 : vector<8x128xf32>
      %33 = arith.truncf %32 : vector<8x128xf32> to vector<8x128xbf16>
      %c0_19 = arith.constant 0 : index
      %c0_20 = arith.constant 0 : index
      %34 = vector.load %arg8[%c0_19, %c0_20] : memref<8x128xbf16, #tpu.memory_space<vmem>>, vector<8x128xbf16>
      tpu.vector_store %arg8[%c0_19, %c0_20], %33 {strides = array<i32>} : memref<8x128xbf16, #tpu.memory_space<vmem>>, vector<8x128xbf16>,
    } else {
    }
    %c0 = arith.constant 0 : index
    %c0_1 = arith.constant 0 : index
    %3 = vector.load %arg8[%c0, %c0_1] : memref<8x128xbf16, #tpu.memory_space<vmem>>, vector<8x128xbf16>
    %c0_2 = arith.constant 0 : index
    %c0_3 = arith.constant 0 : index
    %4 = vector.load %arg5[%c0_2, %c0_3] : memref<128x128xbf16, #tpu.memory_space<vmem>>, vector<128x128xbf16>
    %cst = arith.constant dense<0.000000e+00> : vector<8x128xf32>
    %5 = tpu.matmul %3, %4, %cst {dimension_numbers = #tpu.dot_dimension_numbers<[1], [0], [0], [1], [0, 0, 1, 1], [], []>} : vector<8x128xbf16>, vector<128x128xbf16>, vector<8x128xf32> -> vector<8x128xf32>
    %c0_4 = arith.constant 0 : index
    %c0_5 = arith.constant 0 : index
    %6 = vector.load %arg6[%c0_4, %c0_5] : memref<1x128xf32, #tpu.memory_space<vmem>>, vector<1x128xf32>
    %7 = vector.broadcast %6 : vector<1x128xf32> to vector<8x128xf32>
    %8 = arith.addf %5, %7 : vector<8x128xf32>
    %c0_6 = arith.constant 0 : index
    %c0_7 = arith.constant 0 : index
    %9 = vector.load %arg7[%c0_6, %c0_7] : memref<8x128xf32, #tpu.memory_space<vmem>>, vector<8x128xf32>
    tpu.vector_store %arg7[%c0_6, %c0_7], %8 {strides = array<i32>} : memref<8x128xf32, #tpu.memory_space<vmem>>, vector<8x128xf32>,
    return
  }
  func.func @transform_0(%arg0: i32, %arg1: i32) -> (i32, i32) {
    %c0_i32 = arith.constant 0 : i32
    %c0_i32_0 = arith.constant 0 : i32
    return %arg0, %c0_i32 : i32, i32
  }
  func.func @transform_1(%arg0: i32, %arg1: i32) -> (i32, i32) {
    %c0_i32 = arith.constant 0 : i32
    %c0_i32_0 = arith.constant 0 : i32
    %c0_i32_1 = arith.constant 0 : i32
    return %c0_i32, %c0_i32_0 : i32, i32
  }
  func.func @transform_2(%arg0: i32, %arg1: i32) -> (i32, i32) {
    %c0_i32 = arith.constant 0 : i32
    %c0_i32_0 = arith.constant 0 : i32
    %c0_i32_1 = arith.constant 0 : i32
    return %c0_i32, %c0_i32_0 : i32, i32
  }
  func.func @transform_3(%arg0: i32, %arg1: i32) -> (i32, i32) {
    %c0_i32 = arith.constant 0 : i32
    %c0_i32_0 = arith.constant 0 : i32
    %c0_i32_1 = arith.constant 0 : i32
    return %c0_i32, %c0_i32_0 : i32, i32
  }
  func.func @transform_4(%arg0: i32, %arg1: i32) -> (i32, i32) {
    %c0_i32 = arith.constant 0 : i32
    %c0_i32_0 = arith.constant 0 : i32
    %c0_i32_1 = arith.constant 0 : i32
    return %c0_i32, %c0_i32_0 : i32, i32
  }
  func.func @transform_5(%arg0: i32, %arg1: i32) -> (i32, i32) {
    %c0_i32 = arith.constant 0 : i32
    return %arg0, %arg1 : i32, i32
  }
}

</mosaic_0001>

<bundles_post_ra>
// kernel: tpu_custom_call.1
= control target key start
LH: loop header
LB: loop body
LE: loop exit
PB: predicated region body
PF: predicated region fallthrough
CT: control target
= control target key end

     0   :  { %s1033_s0 = inlined_call_operand.hbm [shape: f32[16,128], index: 0, kind: input, shape index: {}]   ;;  %s1034_s1 = inlined_call_operand.vmem [shape: f32[1,128], index: 1, kind: input, shape index: {}]   ;;  %s1035_s2 = inlined_call_operand.vmem [shape: f32[1,128], index: 2, kind: input, shape index: {}]   ;;  %s1036_s3 = inlined_call_operand.hbm [shape: bf16[128,128], index: 3, kind: input, shape index: {}]   ;;  %s1037_s4 = inlined_call_operand.vmem [shape: f32[1,128], index: 4, kind: input, shape index: {}]   ;;  %s1038_s5 = inlined_call_operand.hbm [shape: f32[16,128], index: 5, kind: output, shape index: {}]  }
   0x1   :  { %1041 = sst [smem:[#allocation13_spill]] %s1036_s3 }
   0x2   :  { %10 = vsyncpa [#allocation4], 0 }
   0x3   :  { %12 = vsyncpa [#allocation4 + $0x1], 0 }
   0x4   :  { %13 = vsyncpa [#allocation7], 0 }
   0x5   :  { %14 = vsyncpa [#allocation5], 0 }
   0x6   :  { %16 = vsyncpa [#allocation5 + $0x1], 0  ;;  %s841_s18 = smov 0   ;;  %s843_s19 = smov 0  }
   0x7   :  { %s845_s20 = smov 0   ;;  %s847_s21 = smov 0  }
   0x8   :  { %s849_s22 = smov 0   ;;  %s851_s23 = smov 0  }
   0x9 LB: > { %s522_s24 = sadd.s32 4294967295, %s802_s23   ;;  %s523_s25 = sadd.s32 4294967294, %s802_s23   ;;  %s802_s23 = sphi %s851_s23, %s22_s23   ;;  %s798_s22 = sphi %s849_s22, %s1061_s22   ;;  %s794_s21 = sphi %s847_s21, %s1060_s21   ;;  %s790_s20 = sphi %s845_s20, %s1059_s20   ;;  %s786_s19 = sphi %s843_s19, %s1058_s19   ;;  %s782_s18 = sphi %s841_s18, %s1057_s18  }
   0xa   : > { %p54_p0 = scmp.ne.s32.totalorder %s786_s19, %s782_s18  ;;  %p875_p1 = scmp.eq.s32.totalorder %s522_s24, 0 }
   0xb   : > { %p879_p2 = scmp.eq.s32.totalorder %s522_s24, 1  ;;  %p170_p3 = scmp.eq.s32.totalorder %s523_s25, 1 }
   0xc   : > { %p885_p4 = por %p875_p1, %p54_p0  ;;  %p524_p5 = scmp.ge.s32.totalorder %s802_s23, 1 }
   0xd   : > { %p890_p6 = por %p170_p3, %p54_p0  ;;  %p177_p7 = scmp.lt.s32.totalorder %s802_s23, 3 }
   0xe   : > { %s1044_s28 = scalar_select %p885_p4, 1, 0 }
   0xf   : > { %s1045_s29 = scalar_select %p890_p6, 1, 0 }
  0x10   : > { %p895_p8 = pnand %p524_p5, %p177_p7  ;;  %s804_s6 = smov [#allocation6]  }
  0x11   : > { %s195_s7 = sshll.u32 %s804_s6, 4  ;;  %s34_s9 = sadd.s32 1, %s798_s22  ;;  %s196_s7 = int_to_ptr.vmem [resolvable:$true] %s195_s7 }
  0x12   : > { %p585_p9 = pneg %p895_p8  ;;  %s675_s10 = scalar_lea.vmem %s196_s7, 1024 }
  0x13   : > { %p676_p13 = scmp.ne.s32.totalorder %s196_s7, %s675_s10  ;;  %p683_p5 = scmp.lt.s32.totalorder %s196_s7, %s196_s7 }
  0x14   : > { %p904_p11 = pnand %p585_p9, %p875_p1  ;;  %p684_p7 = scmp.lt.s32.totalorder %s675_s10, %s675_s10 }
  0x16   : > { %p666_p12 = pneg %p904_p11  ;;  %p685_p6 = por %p684_p7, %p683_p5 }
  0x18   : > { %p678_p0 = pnand %p676_p13, %p666_p12 }
  0x1a   : > { %p679_p3 = pneg %p678_p0 }
  0x1c   : > { %p686_p4 = pnand %p685_p6, %p679_p3 }
  0x1e   : > { %689 = shalt.err (!%p686_p4)
}
  0x1f   : > { %s805_s11 = smov 64   ;;  %s806_s12 = smov 4  }
  0x20   : > { %s1048_s3 = sld [smem:[#allocation13_spill]]  ;;  %p36_p6 = scmp.ge.s32.totalorder %s34_s9, 2 }
  0x21   : > { %s41_s15 = sadd.s32 1, %s790_s20  ;;  %p48_p4 = scmp.ne.s32.totalorder %s790_s20, %s786_s19 }
  0x22   : > { %p49_p9 = scmp.eq.s32.totalorder %s802_s23, 0  ;;  %s1063_s9 = smov (%p36_p6, %s34_s9), 0 }
  0x23   : > { %1049 = sst [smem:[#allocation12_spill]] %s1063_s9  ;;  %p928_p13 = por %p879_p2, %p48_p4 }
  0x24   : > { %p922_p12 = por %p49_p9, %p48_p4  ;;  %s38_s24 = ssub.s32 %s798_s22, %s1063_s9 }
  0x25   : > { %p598_p0 = scmp.lt.s32.totalorder %s802_s23, 2  ;;  %s212_s25 = sand.u32 1, %s790_s20  }
  0x26   : > { %588 = dma.hbm_to_vmem [thread:$0]  (!%p904_p11), %s1048_s3, 1024, %s196_s7, [#allocation7], %s805_s11, %s805_s11, %s806_s12  }
  0x27   : > { %p39_p11 = scmp.eq.s32.totalorder %s38_s24, 0  ;;  %s527_s6 = sshll.u32 %s212_s25, 3 }
  0x28   : > { %s528_s8 = sshll.u32 %s798_s22, 7  ;;  %s216_s13 = scalar_lea.vmem [#allocation3], %s527_s6 }
  0x29   : > { %s937_s7 = scalar_select %p39_p11, %s790_s20, %s41_s15  }
  0x2a   : > { %s221_s12 = scalar_lea.hbm %s1033_s0, %s528_s8  ;;  %s223_s14 = sshll.u32 %s216_s13, 4  ;;  %s224_s14 = int_to_ptr.vmem [resolvable:$true] %s223_s14 }
  0x2b   : > { %p945_p2 = pnand %p598_p0, %p922_p12  ;;  %s213_s3 = scalar_lea.sflag [#allocation4], %s212_s25 }
  0x2c   : > { %s703_s24 = scalar_lea.vmem %s224_s14, 128  ;;  %s807_s15 = smov [#allocation3]  }
  0x2d   : > { %p692_p3 = pneg %p945_p2  ;;  %p704_p5 = scmp.ne.s32.totalorder %s224_s14, %s703_s24 }
  0x2e   : > { %s708_s9 = sshll.u32 %s807_s15, 4  ;;  %s709_s9 = int_to_ptr.vmem [resolvable:$false] %s708_s9 }
  0x2f   : > { %p706_p7 = pnand %p704_p5, %p692_p3  ;;  %s710_s8 = scalar_lea.vmem %s709_s9, 256 }
  0x30   : > { %p711_p4 = scmp.lt.s32.totalorder %s224_s14, %s709_s9  ;;  %p712_p9 = scmp.lt.s32.totalorder %s710_s8, %s703_s24 }
  0x31   : > { %p707_p6 = pneg %p706_p7 }
  0x32   : > { %p713_p11 = por %p712_p9, %p711_p4 }
  0x34   : > { %p714_p10 = pnand %p713_p11, %p707_p6 }
  0x36   : > { %717 = shalt.err (!%p714_p10)
}
  0x37   : > { %592 = dma.hbm_to_vmem [thread:$0]  (!%p945_p2), %s221_s12, 128, %s224_s14, %s213_s3  }
  0x38   : > { %232 = sbr.rel (%p895_p8) target bundleno = 590 (0x24e), region = 40  ;;  %s956_s16 = sand.u32 (!%p895_p8), 1, %s786_s19  }
  0x39   : > { %s530_s25 = sshll.u32 (!%p895_p8), %s956_s16, 3  ;;  %s235_s6 = scalar_lea.sflag (!%p895_p8), [#allocation4], %s956_s16 }
  0x3a   : > { %s238_s9 = scalar_lea.vmem (!%p895_p8), [#allocation3], %s530_s25  ;;  %p1053_p12 = scmp.ne.s32.totalorder (!%p895_p8), %s1044_s28, 0 }
  0x3d   : > { %769 = dma.done.wait (%p1053_p12), %s235_s6, 128  }
  0x3e   : > { %771 = vsyncadd (%p1053_p12), %s235_s6, 4294967168 }
  0x3f   : > { %773 = dma.done.wait (%p875_p1), [#allocation7], 1024  }
  0x40   : > { %775 = vsyncadd (%p875_p1), [#allocation7], 4294966272  ;;  %v274_v0 = vld [vmem:[%s238_s9] sm:$0xff]  ;;  %v808_v6 = vmov 0.0   ;;  %v656_v8 = vld [vmem:[#allocation6 + $0x28] sm:$0xff]   ;;  %vm809_vm0 = vmmov 0  }
  0x41   : > { %275 = vadd.xlane.f32.xlu0 %v274_v0  ;;  %v654_v5 = vld [vmem:[#allocation6 + $0x38] sm:$0xff]   ;;  %557 = vmatprep.subr.bf16.mxu0 %v808_v6  ;;  %v655_v7 = vld [vmem:[#allocation6 + $0x30] sm:$0xff]   ;;  %v657_v9 = vld [vmem:[#allocation6 + $0x20] sm:$0xff]   ;;  %s545_s12 = sshll.u32 %s794_s21, 7  ;;  %s268_s13 = scalar_lea.vmem [#allocation8], %s530_s25 }
  0x42   : > { %558 = vmatpush3.bf16.msra.mxu0 %v654_v5  ;;  %v658_v10 = vld [vmem:[#allocation6 + $0x18] sm:$0xff]   ;;  %v659_v11 = vld [vmem:[#allocation6 + $0x10] sm:$0xff]   ;;  %v660_v12 = vld [vmem:[#allocation6 + $0x8] sm:$0xff]   ;;  %573 = vmatprep.mubr.msk.bf16.mxu0 %vm809_vm0, %v808_v6  ;;  %s433_s14 = sshll.u32 %s268_s13, 4  ;;  %s985_s15 = scalar_lea.hbm %s1038_s5, %s545_s12  ;;  %s987_s14 = int_to_ptr.vmem [resolvable:$true] %s433_s14 }
  0x43   : > { %559 = vmatprep.subr.bf16.mxu0 %v808_v6  ;;  %v661_v13 = vld [vmem:[#allocation6] sm:$0xff]   ;;  %v533_v18 = vld [vmem:[%s1034_s1] ss:$0 sm:$0xff]  ;;  %s419_s8 = scalar_lea.sflag [#allocation5], %s956_s16  ;;  %s718_s21 = scalar_lea.vmem %s987_s14, 128 }
  0x44   : > { %v534_v20 = vld [vmem:[%s1035_s2] ss:$0 sm:$0xff]  ;;  %p719_p1 = scmp.ne.s32.totalorder %s987_s14, %s718_s21  ;;  %s810_s25 = smov [#allocation8]  }
  0x45   : > { %v535_v25 = vld [vmem:[%s1037_s4] ss:$0 sm:$0xff]  ;;  %s722_s6 = sshll.u32 %s810_s25, 4  ;;  %s723_s6 = int_to_ptr.vmem [resolvable:$false] %s722_s6 }
  0x46   : > { %560 = vmatpush3.bf16.msra.mxu0 %v655_v7  ;;  %p720_p8 = pnand %p719_p1, %p928_p13  ;;  %s724_s9 = scalar_lea.vmem %s723_s6, 256 }
  0x47   : > { %561 = vmatprep.subr.bf16.mxu0 %v808_v6  ;;  %p725_p0 = scmp.lt.s32.totalorder %s987_s14, %s723_s6  ;;  %p726_p2 = scmp.lt.s32.totalorder %s724_s9, %s718_s21 }
  0x48   : > { %p721_p10 = pneg %p720_p8 }
  0x49   : > { %p727_p3 = por %p726_p2, %p725_p0 }
  0x4a   : > { %562 = vmatpush3.bf16.msra.mxu0 %v656_v8 }
  0x4b   : > { %563 = vmatprep.subr.bf16.mxu0 %v808_v6  ;;  %p728_p5 = pnand %p727_p3, %p721_p10 }
  0x4e   : > { %564 = vmatpush3.bf16.msra.mxu0 %v657_v9 }
  0x4f   : > { %565 = vmatprep.subr.bf16.mxu0 %v808_v6 }
  0x52   : > { %566 = vmatpush3.bf16.msra.mxu0 %v658_v10 }
  0x53   : > { %567 = vmatprep.subr.bf16.mxu0 %v808_v6 }
  0x56   : > { %568 = vmatpush3.bf16.msra.mxu0 %v659_v11 }
  0x57   : > { %569 = vmatprep.subr.bf16.mxu0 %v808_v6 }
  0x5a   : > { %570 = vmatpush3.bf16.msra.mxu0 %v660_v12 }
  0x5b   : > { %571 = vmatprep.subr.bf16.mxu0 %v808_v6 }
  0x5e   : > { %572 = vmatpush3.bf16.msra.mxu0 %v661_v13 }
  0xca   : > { %v276_v1 = vpop.xlane.xlu0 %275 }
  0xcb   : > { %v278_v2 = vmul.f32 0.0078125, %v276_v1 }
  0xcd   : > { %v279_v3 = vsub.f32 %v274_v0, %v278_v2 }
  0xcf   : > { %v280_v4 = vmul.f32 %v279_v3, %v279_v3 }
  0xd1   : > { %281 = vadd.xlane.f32.xlu0 %v280_v4 }
 0x15a   : > { %v282_v14 = vpop.xlane.xlu0 %281 }
 0x15b   : > { %v283_v15 = vmul.f32 0.0078125, %v282_v14 }
 0x15d   : > { %v284_v16 = vadd.f32 1e-05, %v283_v15 }
 0x15f   : > { %662 = vrsqrt.f32 %v284_v16 }
 0x16c   : > { %v663_v17 = vpop.eup %662 }
 0x16d   : > { %v286_v19 = vmul.f32 %v663_v17, %v279_v3 }
 0x16f   : > { %v294_v21 = vmul.f32 %v533_v18, %v286_v19 }
 0x171   : > { %v302_v22 = vadd.f32 %v534_v20, %v294_v21 }
 0x173   : > { %v303_v23 = vpack.c.bf16 %v302_v22, %v302_v22 }
 0x175   : > { %304 = vst [vmem:[#allocation2] sm:$0xf] %v303_v23 }
 0x17c   : > { %v305_v24 = vld [vmem:[#allocation2] sm:$0xf] }
 0x17d   : > { %574 = vmatmul.mubr.bf16.vlgmr.msra.gmra.mxu0 %v305_v24 }
 0x23d   : > { %v411_v26 = vpop.f32.mrf.mxu0 }
 0x23e   : > { %v412_v27 = vadd.f32 %v535_v25, %v411_v26 }
 0x23f   : > { %v575_v28 = vpop.f32.mrf.mxu0 }
 0x240   : > { %417 = vst [vmem:[%s268_s13] sm:$0xff] %v412_v27 }
 0x241   : > { %v414_v29 = vpop.f32.mrf.mxu0 }
 0x242   : > { %731 = shalt.err (!%p728_p5)
}
 0x243   : > { %s732_s3 = scalar_lea.hbm %s985_s15, 128  ;;  %s736_s28 = scalar_lea.hbm %s1038_s5, 256 }
 0x244   : > { %p733_p7 = scmp.ne.s32.totalorder %s985_s15, %s732_s3  ;;  %p737_p9 = scmp.lt.s32.totalorder %s985_s15, %s1038_s5 }
 0x245   : > { %p738_p11 = scmp.lt.s32.totalorder %s736_s28, %s732_s3 }
 0x246   : > { %p734_p6 = pnand %p733_p7, %p928_p13 }
 0x247   : > { %p739_p12 = por %p738_p11, %p737_p9 }
 0x248   : > { %p735_p4 = pneg %p734_p6 }
 0x24a   : > { %p740_p1 = pnand %p739_p12, %p735_p4 }
 0x24c   : > { %743 = shalt.err (!%p740_p1)
}
 0x24d   : > { %583 = dma.vmem_to_hbm [thread:$0]  (%p928_p13), %s987_s14, 128, %s985_s15, %s419_s8   ;;  %v576_v30 = vpop.f32.mrf.mxu0 }
 0x24e PF: > { %s445_s11 = sand.u32 1, %s782_s18   ;;  %p1054_p8 = scmp.ne.s32.totalorder %s1045_s29, 0 }
 0x24f   : > { %p1055_p10 = scmp.ge.s32.totalorder %s802_s23, 2  ;;  %s446_s12 = scalar_lea.sflag [#allocation5], %s445_s11 }
 0x251   : > { %p594_p0 = pnand %p1055_p10, %p1054_p8 }
 0x253   : > { %p595_p2 = pneg %p594_p0 }
 0x255   : > { %777 = dma.done.wait (%p595_p2), %s446_s12, 128  }
 0x256   : > { %779 = vsyncadd (%p595_p2), %s446_s12, 4294967168  ;;  %s22_s23 = sadd.s32 1, %s802_s23   ;;  %s1056_s17 = sld [smem:[#allocation12_spill]] }
 0x257   : > { %p19_p3 = scmp.ge.s32.totalorder %s22_s23, 4   ;;  %s1057_s18 = smov %s786_s19 }
 0x258   : > { %s1058_s19 = smov %s790_s20  ;;  %s1059_s20 = smov %s937_s7 }
 0x259   : > { %s1060_s21 = smov %s798_s22  ;;  %21 = sbr.rel (!%p19_p3) target bundleno = 9 (0x9), region = 93 }
 0x25c   : > { %s1061_s22 = smov %s1056_s17 }
 0x25e   :  { %451 = vsyncpa [#allocation4], 1 }
 0x25f   :  { %453 = vsyncpa [#allocation4 + $0x1], 1 }
 0x260   :  { %454 = vsyncpa [#allocation7], 1 }
 0x261   :  { %455 = vsyncpa [#allocation5], 1 }
 0x262   :  { %457 = vsyncpa [#allocation5 + $0x1], 1 }

</bundles_post_ra>
